<compile_context>
chip_gen: v7x
topology: tpu7x:2x2x1
jax: 0.10.0
libtpu: 0.0.40
codegen_flags: <defaults>
</compile_context>

<pallas_src>
import jax
import jax.numpy as jnp
from jax.experimental import pallas as pl
from jax.experimental.pallas import tpu as pltpu


def _round_up(n, m):
    return ((n + m - 1) // m) * m


def _ui_attention_kernel(x_ref, p_ref, wx_ref, wp_ref, b_ref, s_ref, o_ref):
    """One batch tile of the packed UIAttention forward.

    x_ref, p_ref  : [TB, LD]   packed inputs (P logical rows of Dp features/row)
    wx_ref, wp_ref: [LD, LD]   block-diagonal copies of W[:D] / W[D:]  (bf16)
    b_ref         : [1,  LD]   bias tiled P times along lanes          (f32)
    s_ref         : [LD, LD]   block-diagonal segment-sum matrix       (f32)
    o_ref         : [TB, LD]   packed output
    """
    x = x_ref[...]
    p = p_ref[...]

    # Linear (split, no concat) + bias + ReLU.
    # bf16 MXU operands, f32 accumulation.
    z = jnp.dot(x.astype(jnp.bfloat16), wx_ref[...],
                preferred_element_type=jnp.float32)
    z = z + jnp.dot(p.astype(jnp.bfloat16), wp_ref[...],
                    preferred_element_type=jnp.float32)
    z = jnp.maximum(z + b_ref[...], 0.0)

    # Segmented softmax over each Dp-lane group.
    # Stabilizer: per packed-row max (constant within each group -> exact math).
    m = jnp.max(z, axis=-1, keepdims=True)
    e = jnp.exp(z - m)
    # Per-group sum broadcast back to every lane of its group via one f32 MXU
    # matmul against the block-diagonal segment-sum matrix (padded feature
    # lanes are masked out of the sum by construction of s_ref).
    denom = jnp.dot(e, s_ref[...], preferred_element_type=jnp.float32)
    # Guard against exp-underflow of an entire group (would give inf with the
    # approx reciprocal).
    denom = jnp.maximum(denom, 1e-30)
    atten = e * pl.reciprocal(denom, approx=True)

    # input * atten  (att_size == latent_dim)
    o_ref[...] = (x.astype(jnp.float32) * atten).astype(o_ref.dtype)


def ui_attention(x, path_output, weight_t, bias, *, block_rows=4096):
    """UIAttention forward.

    x, path_output : [B, D]
    weight_t       : [2*D, A]  (transposed PyTorch Linear weight), A == D
    bias           : [1, A]
    returns        : [B, D]
    """
    B, D = x.shape
    twoD, A = weight_t.shape
    assert twoD == 2 * D and A == D, "UIAttention requires att_size == latent_dim"
    assert path_output.shape == (B, D)

    # ---- feature-packing geometry: P logical rows per 128-lane physical row.
    if D <= 128:
        Dp = 1 << (D - 1).bit_length() if D > 1 else 1   # next pow2 >= D, divides 128
        P = 128 // Dp
    else:
        Dp = _round_up(D, 128)
        P = 1
    LD = P * Dp

    # ---- feature padding (only when D does not divide 128; implies a copy).
    if Dp != D:
        fpad = ((0, 0), (0, Dp - D))
        x_f = jnp.pad(x, fpad)
        p_f = jnp.pad(path_output, fpad)
    else:
        x_f, p_f = x, path_output

    # ---- batch packing.  Pad only to a multiple of the (small) pack factor P;
    # when B % P == 0 the reshape is a free row-major view -> zero copies.
    B_pad = _round_up(B, P)
    if B_pad != B:
        rpad = ((0, B_pad - B), (0, 0))
        x_f = jnp.pad(x_f, rpad)
        p_f = jnp.pad(p_f, rpad)
    R = B_pad // P
    x_packed = x_f.reshape(R, LD)
    p_packed = p_f.reshape(R, LD)

    # ---- block-diagonal weights / segment-sum matrix / tiled bias (resident).
    wx = weight_t[:D, :].astype(jnp.float32)
    wp = weight_t[D:, :].astype(jnp.float32)
    b = bias.astype(jnp.float32)
    if Dp != D:
        wpad = ((0, Dp - D), (0, Dp - D))
        wx = jnp.pad(wx, wpad)
        wp = jnp.pad(wp, wpad)
        b = jnp.pad(b, ((0, 0), (0, Dp - D)))
    eye_p = jnp.eye(P, dtype=jnp.float32)
    wx_bd = jnp.kron(eye_p, wx).astype(jnp.bfloat16)
    wp_bd = jnp.kron(eye_p, wp).astype(jnp.bfloat16)
    # Rows >= D of each group are padded lanes -> excluded from the denominator.
    seg_base = jnp.broadcast_to(
        (jnp.arange(Dp) < D).astype(jnp.float32)[:, None], (Dp, Dp))
    seg_sum = jnp.kron(eye_p, seg_base)
    b_tiled = jnp.tile(b, (1, P))

    # ---- batch tiling.  Big tiles amortize per-step cost; keep >= 2 grid
    # steps so v7x's two TensorCores both get work; cap so double-buffered
    # VMEM stays well under the 32 MiB scoped budget (safe on all chips).
    block_rows = max(8, min((block_rows // 8) * 8, 8192))
    tile_rows = min(block_rows, _round_up(R, 8))
    if tile_rows >= 16 and tile_rows >= R:
        tile_rows = _round_up(-(-R // 2), 8)
    grid = (pl.cdiv(R, tile_rows),)     # ragged last block handled by Pallas

    out_packed = pl.pallas_call(
        _ui_attention_kernel,
        out_shape=jax.ShapeDtypeStruct((R, LD), x.dtype),
        grid_spec=pltpu.PrefetchScalarGridSpec(
            num_scalar_prefetch=0,
            grid=grid,
            in_specs=[
                pl.BlockSpec((tile_rows, LD), lambda i: (i, 0)),   # x   (streamed)
                pl.BlockSpec((tile_rows, LD), lambda i: (i, 0)),   # p   (streamed)
                pl.BlockSpec((LD, LD), lambda i: (0, 0)),          # W[:D] block-diag (resident)
                pl.BlockSpec((LD, LD), lambda i: (0, 0)),          # W[D:] block-diag (resident)
                pl.BlockSpec((1, LD), lambda i: (0, 0)),           # bias (tiled)
                pl.BlockSpec((LD, LD), lambda i: (0, 0)),          # segment-sum matrix
            ],
            out_specs=pl.BlockSpec((tile_rows, LD), lambda i: (i, 0)),
        ),
        compiler_params=pltpu.CompilerParams(
            dimension_semantics=("parallel",),     # batch axis shardable across TCs
            vmem_limit_bytes=32 * 1024 * 1024,     # explicit budget, safe on v7x's 64 MiB
        ),
    )(x_packed, p_packed, wx_bd, wp_bd, b_tiled, seg_sum)

    out = out_packed.reshape(B_pad, Dp)
    if Dp != D:
        out = out[:, :D]
    if B_pad != B:
        out = out[:B]
    return out


def reference(x, p, weight_t, bias):
    cat = jnp.concatenate([x, p], axis=1)
    z = jnp.maximum(cat @ weight_t + bias, 0.0)
    atten = jax.nn.softmax(z, axis=1)
    return x * atten


if __name__ == "__main__":
    key = jax.random.PRNGKey(0)

    def run_case(B, D, block_rows, k):
        k1, k2, k3, k4 = jax.random.split(k, 4)
        x = jax.random.normal(k1, (B, D), dtype=jnp.float32)
        p = jax.random.normal(k2, (B, D), dtype=jnp.float32)
        # xavier_normal_-style init for the Linear weight, stored transposed.
        std = (2.0 / (2 * D + D)) ** 0.5
        w_t = std * jax.random.normal(k3, (2 * D, D), dtype=jnp.float32)
        b = 0.1 * jax.random.normal(k4, (1, D), dtype=jnp.float32)

        out = jax.block_until_ready(ui_attention(x, p, w_t, b, block_rows=block_rows))
        ref = reference(x, p, w_t, b)
        assert out.shape == (B, D)
        # Tolerance covers bf16 MXU operands + approx (EUP) reciprocal.
        assert jnp.allclose(out, ref, atol=2e-3, rtol=2e-2), f"mismatch B={B} D={D}"

    keys = jax.random.split(key, 3)
    # Zero-copy fast path: B % P == 0, ragged last tile (R=24 rows, tile=16).
    run_case(B=96, D=32, block_rows=16, k=keys[0])
    # B not a multiple of the pack factor -> minimal row-pad path.
    run_case(B=90, D=32, block_rows=8, k=keys[1])
    # D does not divide 128 -> feature-padded lane-dense layout (Dp=32, P=4).
    run_case(B=20, D=24, block_rows=8, k=keys[2])

    print("KERNEL_OK")
</pallas_src>

<mosaic_0001>
module attributes {stable_mosaic.version = 11 : i64} {
  func.func @_ui_attention_kernel(%arg0: i32, %arg1: memref<16x128xf32, #tpu.memory_space<vmem>>, %arg2: memref<16x128xf32, #tpu.memory_space<vmem>>, %arg3: memref<128x128xbf16, #tpu.memory_space<vmem>>, %arg4: memref<128x128xbf16, #tpu.memory_space<vmem>>, %arg5: memref<1x128xf32, #tpu.memory_space<vmem>>, %arg6: memref<128x128xf32, #tpu.memory_space<vmem>>, %arg7: memref<16x128xf32, #tpu.memory_space<vmem>>) attributes {dimension_semantics = [#tpu.dimension_semantics<parallel>], iteration_bounds = array<i64: 2>, scalar_prefetch = 0 : i64, scratch_operands = 0 : i64, tpu.core_type = #tpu.core_type<tc>, window_params = [{transform_indices = @transform_0, window_bounds = array<i64: 16, 128>}, {transform_indices = @transform_1, window_bounds = array<i64: 16, 128>}, {pipeline_mode = #tpu.pipeline_mode<synchronous>, transform_indices = @transform_2, window_bounds = array<i64: 128, 128>}, {pipeline_mode = #tpu.pipeline_mode<synchronous>, transform_indices = @transform_3, window_bounds = array<i64: 128, 128>}, {pipeline_mode = #tpu.pipeline_mode<synchronous>, transform_indices = @transform_4, window_bounds = array<i64: 1, 128>}, {pipeline_mode = #tpu.pipeline_mode<synchronous>, transform_indices = @transform_5, window_bounds = array<i64: 128, 128>}, {transform_indices = @transform_6, window_bounds = array<i64: 16, 128>}]} {
    %c0 = arith.constant 0 : index
    %c0_0 = arith.constant 0 : index
    %0 = vector.load %arg1[%c0, %c0_0] : memref<16x128xf32, #tpu.memory_space<vmem>>, vector<16x128xf32>
    %c0_1 = arith.constant 0 : index
    %c0_2 = arith.constant 0 : index
    %1 = vector.load %arg2[%c0_1, %c0_2] : memref<16x128xf32, #tpu.memory_space<vmem>>, vector<16x128xf32>
    %2 = arith.truncf %0 : vector<16x128xf32> to vector<16x128xbf16>
    %c0_3 = arith.constant 0 : index
    %c0_4 = arith.constant 0 : index
    %3 = vector.load %arg3[%c0_3, %c0_4] : memref<128x128xbf16, #tpu.memory_space<vmem>>, vector<128x128xbf16>
    %cst = arith.constant dense<0.000000e+00> : vector<16x128xf32>
    %4 = tpu.matmul %2, %3, %cst {dimension_numbers = #tpu.dot_dimension_numbers<[1], [0], [0], [1], [0, 0, 1, 1], [], []>} : vector<16x128xbf16>, vector<128x128xbf16>, vector<16x128xf32> -> vector<16x128xf32>
    %5 = arith.truncf %1 : vector<16x128xf32> to vector<16x128xbf16>
    %c0_5 = arith.constant 0 : index
    %c0_6 = arith.constant 0 : index
    %6 = vector.load %arg4[%c0_5, %c0_6] : memref<128x128xbf16, #tpu.memory_space<vmem>>, vector<128x128xbf16>
    %cst_7 = arith.constant dense<0.000000e+00> : vector<16x128xf32>
    %7 = tpu.matmul %5, %6, %cst_7 {dimension_numbers = #tpu.dot_dimension_numbers<[1], [0], [0], [1], [0, 0, 1, 1], [], []>} : vector<16x128xbf16>, vector<128x128xbf16>, vector<16x128xf32> -> vector<16x128xf32>
    %8 = arith.addf %4, %7 : vector<16x128xf32>
    %c0_8 = arith.constant 0 : index
    %c0_9 = arith.constant 0 : index
    %9 = vector.load %arg5[%c0_8, %c0_9] : memref<1x128xf32, #tpu.memory_space<vmem>>, vector<1x128xf32>
    %10 = vector.broadcast %9 : vector<1x128xf32> to vector<16x128xf32>
    %11 = arith.addf %8, %10 : vector<16x128xf32>
    %cst_10 = arith.constant 0.000000e+00 : f32
    %12 = vector.broadcast %cst_10 : f32 to vector<16x128xf32>
    %13 = arith.maximumf %11, %12 : vector<16x128xf32>
    %cst_11 = arith.constant dense<0xFF800000> : vector<16xf32>
    %14 = vector.multi_reduction <maximumf>, %13, %cst_11 [1] : vector<16x128xf32> to vector<16xf32>
    %15 = vector.shape_cast %14 : vector<16xf32> to vector<16x1xf32>
    %16 = vector.broadcast %15 : vector<16x1xf32> to vector<16x128xf32>
    %17 = arith.subf %13, %16 : vector<16x128xf32>
    %18 = math.exp %17 : vector<16x128xf32>
    %c0_12 = arith.constant 0 : index
    %c0_13 = arith.constant 0 : index
    %19 = vector.load %arg6[%c0_12, %c0_13] : memref<128x128xf32, #tpu.memory_space<vmem>>, vector<128x128xf32>
    %cst_14 = arith.constant dense<0.000000e+00> : vector<16x128xf32>
    %20 = tpu.matmul %18, %19, %cst_14 {dimension_numbers = #tpu.dot_dimension_numbers<[1], [0], [0], [1], [0, 0, 1, 1], [], []>} : vector<16x128xf32>, vector<128x128xf32>, vector<16x128xf32> -> vector<16x128xf32>
    %cst_15 = arith.constant 1.000000e-30 : f32
    %21 = vector.broadcast %cst_15 : f32 to vector<16x128xf32>
    %22 = arith.maximumf %20, %21 : vector<16x128xf32>
    %23 = tpu.reciprocal %22 {approx = true} : vector<16x128xf32> -> vector<16x128xf32>
    %24 = arith.mulf %18, %23 : vector<16x128xf32>
    %25 = arith.mulf %0, %24 : vector<16x128xf32>
    %c0_16 = arith.constant 0 : index
    %c0_17 = arith.constant 0 : index
    %26 = vector.load %arg7[%c0_16, %c0_17] : memref<16x128xf32, #tpu.memory_space<vmem>>, vector<16x128xf32>
    tpu.vector_store %arg7[%c0_16, %c0_17], %25 {strides = array<i32>} : memref<16x128xf32, #tpu.memory_space<vmem>>, vector<16x128xf32>,
    return
  }
  func.func @transform_0(%arg0: i32) -> (i32, i32) {
    %c0_i32 = arith.constant 0 : i32
    %c0_i32_0 = arith.constant 0 : i32
    return %arg0, %c0_i32 : i32, i32
  }
  func.func @transform_1(%arg0: i32) -> (i32, i32) {
    %c0_i32 = arith.constant 0 : i32
    %c0_i32_0 = arith.constant 0 : i32
    return %arg0, %c0_i32 : i32, i32
  }
  func.func @transform_2(%arg0: i32) -> (i32, i32) {
    %c0_i32 = arith.constant 0 : i32
    %c0_i32_0 = arith.constant 0 : i32
    %c0_i32_1 = arith.constant 0 : i32
    return %c0_i32, %c0_i32_0 : i32, i32
  }
  func.func @transform_3(%arg0: i32) -> (i32, i32) {
    %c0_i32 = arith.constant 0 : i32
    %c0_i32_0 = arith.constant 0 : i32
    %c0_i32_1 = arith.constant 0 : i32
    return %c0_i32, %c0_i32_0 : i32, i32
  }
  func.func @transform_4(%arg0: i32) -> (i32, i32) {
    %c0_i32 = arith.constant 0 : i32
    %c0_i32_0 = arith.constant 0 : i32
    %c0_i32_1 = arith.constant 0 : i32
    return %c0_i32, %c0_i32_0 : i32, i32
  }
  func.func @transform_5(%arg0: i32) -> (i32, i32) {
    %c0_i32 = arith.constant 0 : i32
    %c0_i32_0 = arith.constant 0 : i32
    %c0_i32_1 = arith.constant 0 : i32
    return %c0_i32, %c0_i32_0 : i32, i32
  }
  func.func @transform_6(%arg0: i32) -> (i32, i32) {
    %c0_i32 = arith.constant 0 : i32
    %c0_i32_0 = arith.constant 0 : i32
    return %arg0, %c0_i32 : i32, i32
  }
}

</mosaic_0001>

<bundles_post_ra>
// kernel: tpu_custom_call.1
= control target key start
LH: loop header
LB: loop body
LE: loop exit
PB: predicated region body
PF: predicated region fallthrough
CT: control target
= control target key end

     0   :  { %s1783_s0 = inlined_call_operand.hbm [shape: f32[24,128], index: 0, kind: input, shape index: {}]   ;;  %s1784_s1 = inlined_call_operand.hbm [shape: f32[24,128], index: 1, kind: input, shape index: {}]   ;;  %s1785_s2 = inlined_call_operand.hbm [shape: bf16[128,128], index: 2, kind: input, shape index: {}]   ;;  %s1786_s3 = inlined_call_operand.hbm [shape: bf16[128,128], index: 3, kind: input, shape index: {}]   ;;  %s1787_s4 = inlined_call_operand.vmem [shape: f32[1,128], index: 4, kind: input, shape index: {}]   ;;  %s1788_s5 = inlined_call_operand.hbm [shape: f32[128,128], index: 5, kind: input, shape index: {}]   ;;  %s1789_s6 = inlined_call_operand.hbm [shape: f32[24,128], index: 6, kind: output, shape index: {}]  }
   0x1   :  { %1796 = sst [smem:[#allocation20_spill]] %s1786_s3 }
   0x2   :  { %11 = vsyncpa [#allocation3], 0 }
   0x3   :  { %13 = vsyncpa [#allocation3 + $0x1], 0 }
   0x4   :  { %14 = vsyncpa [#allocation6], 0 }
   0x5   :  { %16 = vsyncpa [#allocation6 + $0x1], 0 }
   0x6   :  { %17 = vsyncpa [#allocation9], 0 }
   0x7   :  { %18 = vsyncpa [#allocation4], 0 }
   0x8   :  { %20 = vsyncpa [#allocation4 + $0x1], 0  ;;  %s1442_s21 = smov 0   ;;  %s1444_s22 = smov 0  }
   0x9   :  { %s1446_s23 = smov 0   ;;  %s1448_s24 = smov 0  }
   0xa LB: > { %s1463_s25 = sadd.s32 4294967295, %s1387_s24   ;;  %s863_s26 = sadd.s32 4294967294, %s1387_s24   ;;  %s1387_s24 = sphi %s1448_s24, %s1819_s24   ;;  %s1383_s23 = sphi %s1446_s23, %s1823_s23   ;;  %s1379_s22 = sphi %s1444_s22, %s1822_s22   ;;  %s1375_s21 = sphi %s1442_s21, %s1821_s21  }
   0xb   : > { %s1467_s27 = sadd.s32 1, %s1387_s24   ;;  %s33_s28 = sadd.s32 1, %s1383_s23 }
   0xc   : > { %1797 = sst [smem:[#allocation17_spill]] %s1467_s27  ;;  %s30_s29 = ssub.s32 %s1387_s24, %s1467_s27 }
   0xd   : > { %p40_p0 = scmp.ne.s32.totalorder %s1383_s23, %s1379_s22  ;;  %p31_p1 = scmp.eq.s32.totalorder %s30_s29, 0 }
   0xe   : > { %p41_p2 = scmp.eq.s32.totalorder %s1387_s24, 0  ;;  %p46_p3 = scmp.ne.s32.totalorder %s1379_s22, %s1375_s21 }
   0xf   : > { %p1790_p4 = scmp.eq.s32.totalorder %s1463_s25, 0  ;;  %p180_p7 = scmp.eq.s32.totalorder %s1463_s25, 1 }
  0x10   : > { %s1479_s30 = scalar_select %p31_p1, %s1383_s23, %s33_s28  }
  0x11   : > { %p1481_p5 = por %p41_p2, %p40_p0  ;;  %p1487_p6 = por %p1790_p4, %p46_p3 }
  0x12   : > { %1798 = sst [smem:[#allocation18_spill]] %s1479_s30  ;;  %p186_p8 = scmp.eq.s32.totalorder %s863_s26, 1 }
  0x13   : > { %s1799_s7 = scalar_select %p1481_p5, 1, 0 }
  0x14   : > { %s1800_s8 = scalar_select %p1487_p6, 1, 0 }
  0x15   : > { %p864_p9 = scmp.ge.s32.totalorder %s1387_s24, 1  ;;  %p193_p10 = scmp.lt.s32.totalorder %s1387_s24, 3 }
  0x16   : > { %p1494_p11 = por %p180_p7, %p40_p0  ;;  %p1498_p12 = por %p186_p8, %p46_p3 }
  0x17   : > { %p1502_p13 = pnand %p864_p9, %p193_p10  ;;  %s1389_s12 = smov [#allocation8]  }
  0x18   : > { %s1801_s9 = scalar_select %p1494_p11, 1, 0 }
  0x19   : > { %s1802_s10 = scalar_select %p1498_p12, 1, 0 }
  0x1a   : > { %s1804_s11 = scalar_select %p1502_p13, 1, 0 }
  0x1b   : > { %1803 = sst [smem:[#allocation19_spill]] %s1802_s10  ;;  %p1077_p1 = pneg %p1502_p13 }
  0x1c   : > { %s218_s13 = sshll.u32 %s1389_s12, 4  ;;  %s1390_s15 = smov [#allocation7]   ;;  %s219_s13 = int_to_ptr.vmem [resolvable:$true] %s218_s13 }
  0x1d   : > { %p1510_p2 = pnand %p1077_p1, %p1790_p4  ;;  %s205_s16 = sshll.u32 %s1390_s15, 4  ;;  %s1514_s16 = int_to_ptr.vmem [resolvable:$true] %s205_s16 }
  0x1e   : > { %s1806_s3 = sld [smem:[#allocation20_spill]] }
  0x1f   : > { %p1524_p3 = pneg %p1510_p2 }
  0x24   : > { %s1169_s19 = scalar_lea.hbm %s1806_s3, 1024 }
  0x25   : > { %p1170_p0 = scmp.ne.s32.totalorder %s1806_s3, %s1169_s19  ;;  %p1176_p9 = scmp.lt.u32.totalorder %s1169_s19, %s1806_s3 }
  0x27   : > { %p1172_p7 = pnand %p1524_p3, %p1170_p0 }
  0x29   : > { %p1173_p8 = pneg %p1172_p7 }
  0x2b   : > { %p1178_p10 = pnand %p1176_p9, %p1173_p8 }
  0x2d   : > { %1181 = shalt.err (!%p1178_p10)
}
  0x2e   : > { %s1182_s15 = scalar_lea.vmem %s219_s13, 1024  ;;  %p1190_p11 = scmp.lt.s32.totalorder %s219_s13, %s219_s13 }
  0x2f   : > { %p1183_p1 = scmp.ne.s32.totalorder %s219_s13, %s1182_s15  ;;  %p1191_p6 = scmp.lt.s32.totalorder %s1182_s15, %s1182_s15 }
  0x31   : > { %p1185_p4 = pnand %p1183_p1, %p1524_p3  ;;  %p1192_p13 = por %p1191_p6, %p1190_p11 }
  0x33   : > { %p1186_p12 = pneg %p1185_p4 }
  0x35   : > { %p1193_p5 = pnand %p1192_p13, %p1186_p12 }
  0x37   : > { %1196 = shalt.err (!%p1193_p5)
}
  0x38   : > { %s1391_s17 = smov 64   ;;  %s1392_s18 = smov 4  }
  0x39   : > { %1083 = dma.hbm_to_vmem [thread:$0]  (!%p1510_p2), %s1806_s3, 1024, %s219_s13, [#allocation9], %s1391_s17, %s1391_s17, %s1392_s18  }
  0x3a   : > { %s1197_s12 = scalar_lea.hbm %s1785_s2, 1024 }
  0x3b   : > { %p1198_p4 = scmp.ne.s32.totalorder %s1785_s2, %s1197_s12  ;;  %p1204_p11 = scmp.lt.u32.totalorder %s1197_s12, %s1785_s2 }
  0x3d   : > { %p1200_p6 = pnand %p1198_p4, %p1524_p3 }
  0x3f   : > { %p1201_p5 = pneg %p1200_p6 }
  0x41   : > { %p1206_p12 = pnand %p1204_p11, %p1201_p5 }
  0x43   : > { %1209 = shalt.err (!%p1206_p12)
}
  0x44   : > { %s1210_s13 = scalar_lea.vmem %s1514_s16, 1024  ;;  %p1218_p8 = scmp.lt.s32.totalorder %s1514_s16, %s1514_s16 }
  0x45   : > { %p1211_p13 = scmp.ne.s32.totalorder %s1514_s16, %s1210_s13  ;;  %p1219_p9 = scmp.lt.s32.totalorder %s1210_s13, %s1210_s13 }
  0x47   : > { %p1213_p0 = pnand %p1211_p13, %p1524_p3  ;;  %p1220_p10 = por %p1219_p9, %p1218_p8 }
  0x49   : > { %p1214_p7 = pneg %p1213_p0 }
  0x4b   : > { %p1221_p1 = pnand %p1220_p10, %p1214_p7 }
  0x4d   : > { %1224 = shalt.err (!%p1221_p1)
}
  0x4e   : > { %1080 = dma.hbm_to_vmem [thread:$0]  (!%p1510_p2), %s1785_s2, 1024, %s1514_s16, [#allocation6], %s1391_s17, %s1391_s17, %s1392_s18  }
  0x4f   : > { %s1393_s10 = smov [#allocation10]   ;;  %s1225_s29 = scalar_lea.hbm %s1788_s5, 2048 }
  0x50   : > { %s234_s20 = sshll.u32 %s1393_s10, 4  ;;  %p1226_p4 = scmp.ne.s32.totalorder %s1788_s5, %s1225_s29  ;;  %s235_s20 = int_to_ptr.vmem [resolvable:$true] %s234_s20 }
  0x51   : > { %p1232_p11 = scmp.lt.u32.totalorder %s1225_s29, %s1788_s5 }
  0x52   : > { %p1228_p6 = pnand %p1226_p4, %p1524_p3 }
  0x54   : > { %p1229_p5 = pneg %p1228_p6 }
  0x56   : > { %p1234_p12 = pnand %p1232_p11, %p1229_p5 }
  0x58   : > { %1237 = shalt.err (!%p1234_p12)
}
  0x59   : > { %s1238_s16 = scalar_lea.vmem %s235_s20, 2048  ;;  %p1246_p8 = scmp.lt.s32.totalorder %s235_s20, %s235_s20 }
  0x5a   : > { %p1239_p13 = scmp.ne.s32.totalorder %s235_s20, %s1238_s16  ;;  %p1247_p9 = scmp.lt.s32.totalorder %s1238_s16, %s1238_s16 }
  0x5c   : > { %p1241_p0 = pnand %p1239_p13, %p1524_p3  ;;  %p1248_p10 = por %p1247_p9, %p1246_p8 }
  0x5e   : > { %p1242_p7 = pneg %p1241_p0 }
  0x60   : > { %p1249_p1 = pnand %p1248_p10, %p1242_p7 }
  0x62   : > { %1252 = shalt.err (!%p1249_p1)
}
  0x63   : > { %s1394_s17 = smov 128   ;;  %s1395_s18 = smov 8  }
  0x64   : > { %1086 = dma.hbm_to_vmem [thread:$0]  (!%p1510_p2), %s1788_s5, 2048, %s235_s20, [#allocation9], %s1394_s17, %s1394_s17, %s1395_s18  }
  0x65   : > { %p868_p4 = scmp.ge.s32.totalorder %s1387_s24, 2 }
  0x66   : > { %p1808_p3 = scmp.ne.s32.totalorder (!%p868_p4), %s1799_s7, 0 }
  0x67   : > { %244 = sbr.rel (%p868_p4) target bundleno = 182 (0xb6), region = 32 }
  0x6e   : > { %247 = sbr.rel (!%p1808_p3) target bundleno = 145 (0x91), region = 36  ;;  %s248_s28 = sand.u32 (%p1808_p3), 1, %s1383_s23  }
  0x6f   : > { %s870_s30 = sshll.u32 (%p1808_p3), %s1387_s24, 1  ;;  %s869_s10 = sshll.u32 (%p1808_p3), %s248_s28, 4 }
  0x70   : > { %s254_s19 = ssub.s32 (%p1808_p3), 3, %s870_s30  ;;  %s1591_s26 = scalar_lea.sflag (%p1808_p3), [#allocation3], %s248_s28 }
  0x71   : > { %p255_p6 = scmp.lt.s32.totalorder (%p1808_p3), %s254_s19, 2  ;;  %s252_s29 = scalar_lea.vmem (%p1808_p3), [#allocation2], %s869_s10 }
  0x75   : > { %s1825_s19 = smov (!%p255_p6, %s254_s19), 2 }
  0x76   : > { %s1588_s14 = sshll.u32 %s1825_s19, 7 }
  0x77   : > { %s259_s20 = ssub.s32 256, %s1588_s14 }
  0x78   : > { %260 = vsyncadd %s1591_s26, %s259_s20  ;;  %p872_p2 = scmp.ne.s32.totalorder %s1588_s14, 0  ;;  %s916_s12 = sshll.u32 %s1387_s24, 8 }
  0x79   : > { %s1599_s16 = scalar_lea.hbm %s1783_s0, %s916_s12  ;;  %s265_s17 = sshll.u32 %s252_s29, 4  ;;  %s1601_s17 = int_to_ptr.vmem [resolvable:$true] %s265_s17 }
  0x7a   : > { %s1253_s18 = scalar_lea.hbm %s1599_s16, %s1588_s14  ;;  %s1257_s28 = scalar_lea.hbm %s1783_s0, 384 }
  0x7b   : > { %p1254_p5 = scmp.ne.s32.totalorder %s1599_s16, %s1253_s18  ;;  %p1258_p13 = scmp.lt.u32.totalorder %s1599_s16, %s1783_s0 }
  0x7c   : > { %p1259_p0 = scmp.lt.u32.totalorder %s1257_s28, %s1253_s18  ;;  %p1261_p8 = scmp.lt.u32.totalorder %s1253_s18, %s1599_s16 }
  0x7d   : > { %p1255_p11 = pnand %p1254_p5, %p872_p2 }
  0x7e   : > { %p1260_p7 = por %p1259_p0, %p1258_p13 }
  0x7f   : > { %p1256_p12 = pneg %p1255_p11 }
  0x80   : > { %p1262_p9 = por %p1261_p8, %p1260_p7 }
  0x82   : > { %p1263_p10 = pnand %p1262_p9, %p1256_p12 }
  0x84   : > { %1266 = shalt.err (!%p1263_p10)
}
  0x85   : > { %s1267_s19 = scalar_lea.vmem %s1601_s17, %s1588_s14  ;;  %s1396_s20 = smov [#allocation2]  }
  0x86   : > { %p1268_p1 = scmp.ne.s32.totalorder %s1601_s17, %s1267_s19  ;;  %s1271_s29 = sshll.u32 %s1396_s20, 4  ;;  %s1272_s29 = int_to_ptr.vmem [resolvable:$false] %s1271_s29 }
  0x87   : > { %s1273_s12 = scalar_lea.vmem %s1272_s29, 512  ;;  %p1274_p5 = scmp.lt.s32.totalorder %s1601_s17, %s1272_s29 }
  0x88   : > { %p1269_p3 = pnand %p1268_p1, %p872_p2  ;;  %p1275_p11 = scmp.lt.s32.totalorder %s1273_s12, %s1267_s19 }
  0x8a   : > { %p1270_p6 = pneg %p1269_p3  ;;  %p1276_p13 = por %p1275_p11, %p1274_p5 }
  0x8c   : > { %p1277_p0 = pnand %p1276_p13, %p1270_p6 }
  0x8e   : > { %1280 = shalt.err (!%p1277_p0)
}
  0x8f   : > { %s1397_s15 = smov 128   ;;  %s1398_s13 = smov 8  }
  0x90   : > { %271 = dma.hbm_to_vmem [thread:$0]  (%p872_p2), %s1599_s16, %s1588_s14, %s1601_s17, %s1591_s26, %s1397_s15, %s1397_s15, %s1398_s13  }
  0x91 PF: > { %p1809_p12 = scmp.ne.s32.totalorder %s1799_s7, 0 }
  0x92   : > { %s275_s18 = sand.u32 (%p1809_p12), 1, %s1387_s24   ;;  %s277_s27 = sand.u32 (%p1809_p12), 1, %s1383_s23  }
  0x93   : > { %274 = sbr.rel (!%p1809_p12) target bundleno = 182 (0xb6), region = 40  ;;  %s876_s3 = sshll.u32 (%p1809_p12), %s277_s27, 4 }
  0x94   : > { %s877_s28 = sshll.u32 (%p1809_p12), %s1387_s24, 1  ;;  %s1636_s20 = scalar_lea.sflag (%p1809_p12), [#allocation6], %s275_s18 }
  0x95   : > { %s281_s30 = ssub.s32 (%p1809_p12), 3, %s877_s28  ;;  %s279_s14 = scalar_lea.vmem (%p1809_p12), [#allocation5], %s876_s3 }
  0x96   : > { %p282_p7 = scmp.lt.s32.totalorder (%p1809_p12), %s281_s30, 2 }
  0x9a   : > { %s1827_s30 = smov (!%p282_p7, %s281_s30), 2 }
  0x9b   : > { %s1633_s10 = sshll.u32 %s1827_s30, 7 }
  0x9c   : > { %s286_s19 = ssub.s32 256, %s1633_s10 }
  0x9d   : > { %287 = vsyncadd %s1636_s20, %s286_s19  ;;  %p879_p2 = scmp.ne.s32.totalorder %s1633_s10, 0  ;;  %s917_s7 = sshll.u32 %s1387_s24, 8 }
  0x9e   : > { %s1644_s17 = scalar_lea.hbm %s1784_s1, %s917_s7  ;;  %s292_s29 = sshll.u32 %s279_s14, 4  ;;  %s1646_s29 = int_to_ptr.vmem [resolvable:$true] %s292_s29 }
  0x9f   : > { %s1281_s12 = scalar_lea.hbm %s1644_s17, %s1633_s10  ;;  %s1285_s18 = scalar_lea.hbm %s1784_s1, 384 }
  0xa0   : > { %p1282_p8 = scmp.ne.s32.totalorder %s1644_s17, %s1281_s12  ;;  %p1286_p1 = scmp.lt.u32.totalorder %s1644_s17, %s1784_s1 }
  0xa1   : > { %p1287_p3 = scmp.lt.u32.totalorder %s1285_s18, %s1281_s12  ;;  %p1289_p5 = scmp.lt.u32.totalorder %s1281_s12, %s1644_s17 }
  0xa2   : > { %p1283_p9 = pnand %p1282_p8, %p879_p2 }
  0xa3   : > { %p1288_p6 = por %p1287_p3, %p1286_p1 }
  0xa4   : > { %p1284_p10 = pneg %p1283_p9 }
  0xa5   : > { %p1290_p11 = por %p1289_p5, %p1288_p6 }
  0xa7   : > { %p1291_p13 = pnand %p1290_p11, %p1284_p10 }
  0xa9   : > { %1294 = shalt.err (!%p1291_p13)
}
  0xaa   : > { %s1295_s28 = scalar_lea.vmem %s1646_s29, %s1633_s10  ;;  %s1399_s30 = smov [#allocation5]  }
  0xab   : > { %p1296_p0 = scmp.ne.s32.totalorder %s1646_s29, %s1295_s28  ;;  %s1299_s19 = sshll.u32 %s1399_s30, 4  ;;  %s1300_s19 = int_to_ptr.vmem [resolvable:$false] %s1299_s19 }
  0xac   : > { %s1301_s14 = scalar_lea.vmem %s1300_s19, 512  ;;  %p1302_p8 = scmp.lt.s32.totalorder %s1646_s29, %s1300_s19 }
  0xad   : > { %p1297_p12 = pnand %p1296_p0, %p879_p2  ;;  %p1303_p9 = scmp.lt.s32.totalorder %s1301_s14, %s1295_s28 }
  0xaf   : > { %p1298_p7 = pneg %p1297_p12  ;;  %p1304_p1 = por %p1303_p9, %p1302_p8 }
  0xb1   : > { %p1305_p3 = pnand %p1304_p1, %p1298_p7 }
  0xb3   : > { %1308 = shalt.err (!%p1305_p3)
}
  0xb4   : > { %s1400_s7 = smov 128   ;;  %s1401_s26 = smov 8  }
  0xb5   : > { %298 = dma.hbm_to_vmem [thread:$0]  (%p879_p2), %s1644_s17, %s1633_s10, %s1646_s29, %s1636_s20, %s1400_s7, %s1400_s7, %s1401_s26  }
  0xb6 PF: > { %p1810_p10 = scmp.ne.s32.totalorder %s1804_s11, 0 }
  0xb7   : > { %s1676_s16 = sand.u32 (!%p1810_p10), 1, %s1379_s22   ;;  %p1811_p6 = scmp.ne.s32.totalorder (!%p1810_p10), %s1800_s8, 0 }
  0xb8   : > { %304 = sbr.rel (%p1810_p10) target bundleno = 873 (0x369), region = 44  ;;  %s1679_s12 = sshll.u32 (!%p1810_p10), %s1676_s16, 4 }
  0xb9   : > { %s307_s15 = scalar_lea.sflag (!%p1810_p10), [#allocation3], %s1676_s16  ;;  %s310_s13 = scalar_lea.vmem (!%p1810_p10), [#allocation2], %s1679_s12 }
  0xbf   : > { %1354 = dma.done.wait (%p1811_p6), %s307_s15, 256  }
  0xc0   : > { %1356 = vsyncadd (%p1811_p6), %s307_s15, 4294967040  ;;  %s315_s11 = sand.u32 1, %s1463_s25   ;;  %s319_s20 = scalar_lea.vmem [#allocation5], %s1679_s12 }
  0xc1   : > { %s316_s10 = scalar_lea.sflag [#allocation6], %s315_s11 }
  0xc2   : > { %1358 = dma.done.wait (%p1811_p6), %s316_s10, 256  }
  0xc3   : > { %1360 = vsyncadd (%p1811_p6), %s316_s10, 4294967040  ;;  %p1812_p2 = scmp.eq.s32.totalorder %s1463_s25, 0 }
  0xc5   : > { %1362 = dma.done.wait (%p1812_p2), [#allocation6], 1024   ;;  %p1813_p5 = pmov %p1812_p2 }
  0xc6   : > { %p1814_p11 = pmov %p1812_p2 }
  0xc7   : > { %1364 = vsyncadd (%p1813_p5), [#allocation6], 4294966272 }
  0xc8   : > { %1366 = dma.done.wait (%p1814_p11), [#allocation9], 3072   ;;  %p1815_p13 = pmov %p1812_p2 }
  0xc9   : > { %v1402_v0 = vmov 0.0   ;;  %vm1403_vm0 = vmmov 0   ;;  %v1145_v1 = vld [vmem:[#allocation8] sm:$0xff]   ;;  %v1147_v3 = vld [vmem:[#allocation8 + $0x8] sm:$0xff]   ;;  %v1149_v5 = vld [vmem:[#allocation8 + $0x10] sm:$0xff]   ;;  %s364_s29 = scalar_lea.vmem [#allocation11], %s1679_s12 }
  0xca   : > { %1368 = vsyncadd (%p1815_p13), [#allocation9], 4294964224  ;;  %955 = vmatprep.subr.bf16.mxu0 %v1402_v0  ;;  %975 = vmatprep.subr.bf16.mxu1 %v1402_v0  ;;  %v1146_v2 = vld [vmem:[#allocation7] sm:$0xff]   ;;  %v1148_v4 = vld [vmem:[#allocation7 + $0x8] sm:$0xff]   ;;  %s720_s18 = scalar_lea.sflag [#allocation4], %s1676_s16  ;;  %p1816_p0 = scmp.ne.s32.totalorder %s1801_s9, 0 }
  0xcb   : > { %971 = vmatprep.mubr.msk.bf16.mxu0 %vm1403_vm0, %v1402_v0  ;;  %991 = vmatprep.mubr.msk.bf16.mxu1 %vm1403_vm0, %v1402_v0  ;;  %v1150_v6 = vld [vmem:[#allocation7 + $0x10] sm:$0xff]   ;;  %v1151_v7 = vld [vmem:[#allocation8 + $0x18] sm:$0xff]   ;;  %v1153_v9 = vld [vmem:[#allocation8 + $0x20] sm:$0xff]   ;;  %s908_s27 = sshll.u32 (%p1816_p0), %s1463_s25, 1 }
  0xcc   : > { %956 = vmatpush3.bf16.msra.mxu0 %v1145_v1  ;;  %976 = vmatpush3.bf16.msra.mxu1 %v1146_v2  ;;  %v1152_v8 = vld [vmem:[#allocation7 + $0x18] sm:$0xff]   ;;  %v1154_v10 = vld [vmem:[#allocation7 + $0x20] sm:$0xff]   ;;  %v1155_v11 = vld [vmem:[#allocation8 + $0x28] sm:$0xff]   ;;  %s728_s3 = ssub.s32 (%p1816_p0), 3, %s908_s27 }
  0xcd   : > { %957 = vmatprep.subr.bf16.mxu0 %v1402_v0  ;;  %977 = vmatprep.subr.bf16.mxu1 %v1402_v0  ;;  %v1156_v12 = vld [vmem:[#allocation7 + $0x28] sm:$0xff]   ;;  %v1157_v13 = vld [vmem:[#allocation8 + $0x30] sm:$0xff]   ;;  %v1159_v15 = vld [vmem:[#allocation8 + $0x38] sm:$0xff]   ;;  %p729_p12 = scmp.lt.s32.totalorder (%p1816_p0), %s728_s3, 2 }
  0xce   : > { %v1158_v14 = vld [vmem:[#allocation7 + $0x30] sm:$0xff]   ;;  %v384_v17 = vld [vmem:[%s319_s20 + $0x8] sm:$0xff]  ;;  %v618_v23 = vld [vmem:[#allocation10] sm:$0xff] }
  0xcf   : > { %v383_v16 = vld [vmem:[%s319_s20] sm:$0xff]  ;;  %v1160_v18 = vld [vmem:[#allocation7 + $0x38] sm:$0xff]   ;;  %v619_v24 = vld [vmem:[#allocation10 + $0x8] sm:$0xff] }
  0xd0   : > { %958 = vmatpush3.bf16.msra.mxu0 %v1147_v3  ;;  %978 = vmatpush3.bf16.msra.mxu1 %v1148_v4  ;;  %v1707_v19 = vld [vmem:[%s310_s13] sm:$0xff]  ;;  %v1711_v20 = vld [vmem:[%s310_s13 + $0x8] sm:$0xff]  ;;  %v402_v21 = vpack.c.bf16 %v384_v17, %v383_v16  ;;  %v1030_v26 = vpack.c.bf16 %v619_v24, %v618_v23 }
  0xd1   : > { %959 = vmatprep.subr.bf16.mxu0 %v1402_v0  ;;  %979 = vmatprep.subr.bf16.mxu1 %v1402_v0  ;;  %v385_v22 = vpack.c.bf16 %v1711_v20, %v1707_v19  ;;  %v620_v25 = vld [vmem:[#allocation10 + $0x10] sm:$0xff]  ;;  %v621_v27 = vld [vmem:[#allocation10 + $0x18] sm:$0xff]  ;;  %v622_v29 = vld [vmem:[#allocation10 + $0x20] sm:$0xff] }
  0xd2   : > { %v1034_v28 = vpack.c.bf16 %v621_v27, %v620_v25  ;;  %v623_v30 = vld [vmem:[#allocation10 + $0x28] sm:$0xff]  ;;  %v624_v32 = vld [vmem:[#allocation10 + $0x30] sm:$0xff]  ;;  %v625_v33 = vld [vmem:[#allocation10 + $0x38] sm:$0xff] }
  0xd3   : > { %v1038_v31 = vpack.c.bf16 %v623_v30, %v622_v29  ;;  %v1042_v34 = vpack.c.bf16 %v625_v33, %v624_v32  ;;  %v906_v38 = vld [vmem:[%s1787_s4] ss:$0 sm:$0xff]  ;;  %v627_v51 = vld [vmem:[#allocation10 + $0x48] sm:$0xff]  ;;  %v628_v53 = vld [vmem:[#allocation10 + $0x50] sm:$0xff] }
  0xd4   : > { %960 = vmatpush3.bf16.msra.mxu0 %v1149_v5  ;;  %980 = vmatpush3.bf16.msra.mxu1 %v1150_v6  ;;  %v626_v50 = vld [vmem:[#allocation10 + $0x40] sm:$0xff]  ;;  %v629_v54 = vld [vmem:[#allocation10 + $0x58] sm:$0xff]  ;;  %v631_v57 = vld [vmem:[#allocation10 + $0x68] sm:$0xff] }
  0xd5   : > { %961 = vmatprep.subr.bf16.mxu0 %v1402_v0  ;;  %981 = vmatprep.subr.bf16.mxu1 %v1402_v0  ;;  %v1046_v52 = vpack.c.bf16 %v627_v51, %v626_v50  ;;  %v1050_v55 = vpack.c.bf16 %v629_v54, %v628_v53  ;;  %v630_v56 = vld [vmem:[#allocation10 + $0x60] sm:$0xff]  ;;  %v632_v58 = vld [vmem:[#allocation10 + $0x70] sm:$0xff]  ;;  %v633_v60 = vld [vmem:[#allocation10 + $0x78] sm:$0xff] }
  0xd6   : > { %v1054_v59 = vpack.c.bf16 %v631_v57, %v630_v56  ;;  %v1058_v61 = vpack.c.bf16 %v633_v60, %v632_v58 }
  0xd8   : > { %962 = vmatpush3.bf16.msra.mxu0 %v1151_v7  ;;  %982 = vmatpush3.bf16.msra.mxu1 %v1152_v8 }
  0xd9   : > { %963 = vmatprep.subr.bf16.mxu0 %v1402_v0  ;;  %983 = vmatprep.subr.bf16.mxu1 %v1402_v0 }
  0xdc   : > { %964 = vmatpush3.bf16.msra.mxu0 %v1153_v9  ;;  %984 = vmatpush3.bf16.msra.mxu1 %v1154_v10 }
  0xdd   : > { %965 = vmatprep.subr.bf16.mxu0 %v1402_v0  ;;  %985 = vmatprep.subr.bf16.mxu1 %v1402_v0 }
  0xe0   : > { %966 = vmatpush3.bf16.msra.mxu0 %v1155_v11  ;;  %986 = vmatpush3.bf16.msra.mxu1 %v1156_v12 }
  0xe1   : > { %967 = vmatprep.subr.bf16.mxu0 %v1402_v0  ;;  %987 = vmatprep.subr.bf16.mxu1 %v1402_v0 }
  0xe4   : > { %968 = vmatpush3.bf16.msra.mxu0 %v1157_v13  ;;  %988 = vmatpush3.bf16.msra.mxu1 %v1158_v14 }
  0xe5   : > { %969 = vmatprep.subr.bf16.mxu0 %v1402_v0  ;;  %989 = vmatprep.subr.bf16.mxu1 %v1402_v0 }
  0xe8   : > { %970 = vmatpush3.bf16.msra.mxu0 %v1159_v15  ;;  %990 = vmatpush3.bf16.msra.mxu1 %v1160_v18 }
  0xe9   : > { %1031 = vmatprep.subr.bf16.mxu0 %v1030_v26 }
  0xeb   : > { %972 = vmatmul.mubr.bf16.vlgmr.msra.gmra.mrb[0].mxu0 %v402_v21  ;;  %992 = vmatmul.mubr.bf16.vlgmr.msra.gmra.mrb[0].mxu1 %v385_v22 }
  0xec   : > { %1033 = vmatpush3.bf16.msra.mxu0 %v1030_v26 }
  0xed   : > { %1035 = vmatprep.subr.bf16.mxu0 %v1034_v28 }
  0xf0   : > { %1037 = vmatpush3.bf16.msra.mxu0 %v1034_v28 }
  0xf1   : > { %1039 = vmatprep.subr.bf16.mxu0 %v1038_v31 }
  0xf4   : > { %1041 = vmatpush3.bf16.msra.mxu0 %v1038_v31 }
  0xf5   : > { %1043 = vmatprep.subr.bf16.mxu0 %v1042_v34 }
  0xf8   : > { %1045 = vmatpush3.bf16.msra.mxu0 %v1042_v34 }
  0xf9   : > { %1047 = vmatprep.subr.bf16.mxu0 %v1046_v52 }
  0xfc   : > { %1049 = vmatpush3.bf16.msra.mxu0 %v1046_v52 }
  0xfd   : > { %1051 = vmatprep.subr.bf16.mxu0 %v1050_v55 }
 0x100   : > { %1053 = vmatpush3.bf16.msra.mxu0 %v1050_v55 }
 0x101   : > { %1055 = vmatprep.subr.bf16.mxu0 %v1054_v59 }
 0x104   : > { %1057 = vmatpush3.bf16.msra.mxu0 %v1054_v59 }
 0x105   : > { %1059 = vmatprep.subr.bf16.mxu0 %v1058_v61 }
 0x108   : > { %1061 = vmatpush3.bf16.msra.mxu0 %v1058_v61 }
 0x1be   : > { %v501_v35 = vpop.f32.mrb[0].mxu0  ;;  %v590_v36 = vpop.f32.mrb[0].mxu1 }
 0x1bf   : > { %v973_v37 = vpop.f32.mrb[1].mxu0  ;;  %v591_v39 = vadd.f32 %v590_v36, %v501_v35  ;;  %v993_v40 = vpop.f32.mrb[1].mxu1 }
 0x1c0   : > { %v504_v41 = vpop.f32.mrb[2].mxu0  ;;  %v593_v42 = vpop.f32.mrb[2].mxu1 }
 0x1c1   : > { %v974_v43 = vpop.f32.mrb[3].mxu0  ;;  %v594_v44 = vadd.f32 %v593_v42, %v504_v41  ;;  %v994_v45 = vpop.f32.mrb[3].mxu1  ;;  %v604_v46 = vadd.f32 %v906_v38, %v591_v39 }
 0x1c3   : > { %v606_v47 = vmax.f32 %v604_v46, 0.0  ;;  %v605_v48 = vadd.f32 %v906_v38, %v594_v44 }
 0x1c5   : > { %608 = vmax.xlane.f32.xlu0 %v606_v47  ;;  %v607_v49 = vmax.f32 %v605_v48, 0.0 }
 0x1c9   : > { %610 = vmax.xlane.f32.xlu0 %v607_v49 }
 0x252   : > { %v609_v62 = vpop.xlane.xlu0 %608 }
 0x253   : > { %v612_v63 = vsub.f32 %v606_v47, %v609_v62 }
 0x255   : > { %v614_v0 = vmul.f32 1.442695, %v612_v63 }
 0x256   : > { %v611_v1 = vpop.xlane.xlu0 %610 }
 0x257   : > { %1161 = vpow2.f32 %v614_v0  ;;  %v613_v2 = vsub.f32 %v607_v49, %v611_v1 }
 0x259   : > { %v616_v3 = vmul.f32 1.442695, %v613_v2 }
 0x25b   : > { %1163 = vpow2.f32 %v616_v3 }
 0x261   : > { %v1162_v4 = vpop.eup %1161 }
 0x262   : > { %1027 = vmatprep.mubr.f32.mxu0 %v1162_v4 }
 0x265   : > { %v1164_v5 = vpop.eup %1163 }
 0x266   : > { %1028 = vmatmul.mubr.f32.vlgmr.msra.gmra.mrb[4].mxu0 %v1164_v5 }
 0x339   : > { %v1029_v6 = vpop.f32.mrb[4].mxu0 }
 0x33a   : > { %v710_v7 = vmax.f32 %v1029_v6, 1e-30  ;;  %v700_v8 = vpop.f32.mrb[5].mxu0 }
 0x33b   : > { %v709_v9 = vmax.f32 %v700_v8, 1e-30 }
 0x33c   : > { %1165 = vrcp.f32 %v710_v7 }
 0x33d   : > { %1167 = vrcp.f32 %v709_v9 }
 0x346   : > { %v1166_v10 = vpop.eup %1165  ;;  %726 = sbr.rel (!%p1816_p0) target bundleno = 873 (0x369), region = 68 }
 0x347   : > { %v1168_v11 = vpop.eup %1167  ;;  %v714_v12 = vmul.f32 %v1166_v10, %v1164_v5 }
 0x348   : > { %v713_v13 = vmul.f32 %v1168_v11, %v1162_v4 }
 0x349   : > { %v716_v14 = vmul.f32 %v714_v12, %v1711_v20 }
 0x34a   : > { %v715_v15 = vmul.f32 %v713_v13, %v1707_v19 }
 0x34b   : > { %718 = vst [vmem:[%s364_s29 + $0x8] sm:$0xff] %v716_v14 }
 0x34c   : > { %717 = vst [vmem:[%s364_s29] sm:$0xff] %v715_v15 }
 0x34d   : > { %s1829_s3 = smov (!%p729_p12, %s728_s3), 2 }
 0x34e   : > { %s1725_s28 = sshll.u32 %s1829_s3, 7 }
 0x34f   : > { %s733_s30 = ssub.s32 256, %s1725_s28 }
 0x350   : > { %734 = vsyncadd %s720_s18, %s733_s30  ;;  %p910_p7 = scmp.ne.s32.totalorder %s1725_s28, 0  ;;  %s918_s19 = sshll.u32 %s1463_s25, 8 }
 0x351   : > { %s1735_s7 = scalar_lea.hbm %s1789_s6, %s918_s19  ;;  %s739_s26 = sshll.u32 %s364_s29, 4  ;;  %s1737_s26 = int_to_ptr.vmem [resolvable:$true] %s739_s26 }
 0x352   : > { %s1309_s12 = scalar_lea.vmem %s1737_s26, %s1725_s28  ;;  %s1404_s15 = smov [#allocation11]  }
 0x353   : > { %p1310_p8 = scmp.ne.s32.totalorder %s1737_s26, %s1309_s12  ;;  %s1313_s13 = sshll.u32 %s1404_s15, 4  ;;  %s1314_s13 = int_to_ptr.vmem [resolvable:$false] %s1313_s13 }
 0x354   : > { %s1315_s25 = scalar_lea.vmem %s1314_s13, 512  ;;  %p1316_p3 = scmp.lt.s32.totalorder %s1737_s26, %s1314_s13 }
 0x355   : > { %p1311_p9 = pnand %p1310_p8, %p910_p7  ;;  %p1317_p10 = scmp.lt.s32.totalorder %s1315_s25, %s1309_s12 }
 0x357   : > { %p1312_p1 = pneg %p1311_p9  ;;  %p1318_p6 = por %p1317_p10, %p1316_p3 }
 0x359   : > { %p1319_p2 = pnand %p1318_p6, %p1312_p1 }
 0x35b   : > { %1322 = shalt.err (!%p1319_p2)
}
 0x35c   : > { %s1323_s11 = scalar_lea.hbm %s1735_s7, %s1725_s28  ;;  %s1327_s8 = scalar_lea.hbm %s1789_s6, 384 }
 0x35d   : > { %p1324_p5 = scmp.ne.s32.totalorder %s1735_s7, %s1323_s11  ;;  %p1328_p0 = scmp.lt.u32.totalorder %s1735_s7, %s1789_s6 }
 0x35e   : > { %p1329_p12 = scmp.lt.u32.totalorder %s1327_s8, %s1323_s11  ;;  %p1331_p9 = scmp.lt.u32.totalorder %s1323_s11, %s1735_s7 }
 0x35f   : > { %p1325_p11 = pnand %p1324_p5, %p910_p7 }
 0x360   : > { %p1330_p8 = por %p1329_p12, %p1328_p0 }
 0x361   : > { %p1326_p13 = pneg %p1325_p11 }
 0x362   : > { %p1332_p1 = por %p1331_p9, %p1330_p8 }
 0x364   : > { %p1333_p3 = pnand %p1332_p1, %p1326_p13 }
 0x366   : > { %1336 = shalt.err (!%p1333_p3)
}
 0x367   : > { %s1405_s27 = smov 128   ;;  %s1406_s3 = smov 8  }
 0x368   : > { %745 = dma.vmem_to_hbm [thread:$0]  (%p910_p7), %s1737_s26, %s1725_s28, %s1735_s7, %s720_s18, %s1405_s27, %s1405_s27, %s1406_s3  }
 0x369 PF: > { %s1817_s30 = sld [smem:[#allocation19_spill]]  ;;  %s754_s19 = sand.u32 1, %s1375_s21  }
 0x36a   : > { %s755_s9 = scalar_lea.sflag [#allocation4], %s754_s19 }
 0x36f   : > { %p1818_p10 = scmp.ne.s32.totalorder %s1817_s30, 0 }
 0x371   : > { %p1088_p6 = pnand %p868_p4, %p1818_p10 }
 0x373   : > { %1370 = dma.done.wait (!%p1088_p6), %s755_s9, 256  }
 0x374   : > { %1372 = vsyncadd (!%p1088_p6), %s755_s9, 4294967040  ;;  %s1819_s24 = sld [smem:[#allocation17_spill]]  ;;  %s1820_s14 = sld [smem:[#allocation18_spill]] }
 0x375   : > { %s1821_s21 = smov %s1379_s22  ;;  %s1822_s22 = smov %s1383_s23 }
 0x37a   : > { %p23_p2 = scmp.ge.s32.totalorder %s1819_s24, 4   ;;  %s1823_s23 = smov %s1820_s14 }
 0x37c   :  { %25 = sbr.rel (!%p23_p2) target bundleno = 10 (0xa), region = 114 }
 0x383   :  { %760 = vsyncpa [#allocation3], 1 }
 0x384   :  { %762 = vsyncpa [#allocation3 + $0x1], 1 }
 0x385   :  { %763 = vsyncpa [#allocation6], 1 }
 0x386   :  { %765 = vsyncpa [#allocation6 + $0x1], 1 }
 0x387   :  { %766 = vsyncpa [#allocation9], 1 }
 0x388   :  { %767 = vsyncpa [#allocation4], 1 }
 0x389   :  { %769 = vsyncpa [#allocation4 + $0x1], 1 }

</bundles_post_ra>
